<compile_context>
chip_gen: v5e
topology: v5e:2x2
jax: 0.10.0
libtpu: 0.0.40
codegen_flags: <defaults>
</compile_context>

<pallas_src>
import functools

import jax
import jax.numpy as jnp
from jax.experimental import pallas as pl
from jax.experimental.pallas import tpu as pltpu


# ----------------------------- tiling helpers ------------------------------

_BLOCK_BUDGET = 2 << 20  # target bytes for one (bb, T, tc) slab


def _largest_divisor_leq(n, cap):
    cap = max(1, min(n, cap))
    for d in range(cap, 0, -1):
        if n % d == 0:
            return d
    return 1


def _pick_tiles(B, T, C, itemsize):
    """Pick (bb, tc): batch rows per block and channel tile.

    tc is a lane-dense multiple of 128 dividing C when possible (BlockSpec
    last dim must be a multiple of 128 or the full extent); otherwise full C.
    bb packs multiple batch rows into one block when a single (T, tc) slab is
    far below the budget (small-C case), amortizing per-grid-step overhead.
    """
    if C % 128 == 0:
        tc = 128
        for cand in (1024, 512, 256, 128):
            if C % cand == 0 and T * cand * itemsize <= _BLOCK_BUDGET:
                tc = cand
                break
    else:
        # TODO(synk): for very small C a wrapper-side transpose so T maps to
        # lanes would avoid masked sub-128 stores, but the extra transpose
        # pass costs more HBM traffic than it saves for this mem-bound op.
        tc = C
    per_batch = max(T * tc * itemsize, 1)
    bb = _largest_divisor_leq(B, _BLOCK_BUDGET // per_batch)
    return bb, tc


def _vmem_limit_bytes(bb, T, tc, itemsize):
    big = bb * T * tc * itemsize
    # x in + y out, each double-buffered, plus stats/affine vectors + margin.
    need = 4 * big + (2 << 20)
    return int(min(max(need, 16 << 20), 64 << 20))


# ----------------------------- kernels -------------------------------------


def _norm_kernel(x_ref, *rest, eps, affine):
    if affine:
        w_ref, b_ref, y_ref, mean_ref, std_ref = rest
    else:
        y_ref, mean_ref, std_ref = rest

    x = x_ref[...].astype(jnp.float32)                      # (bb, T, tc)
    mean = jnp.mean(x, axis=1, keepdims=True)               # (bb, 1, tc)
    var = jnp.mean((x - mean) ** 2, axis=1, keepdims=True)  # biased variance
    std = jnp.sqrt(var + eps)                               # (bb, 1, tc)
    inv_std = 1.0 / std                                     # exact, O(C) only

    mean_ref[...] = mean.astype(mean_ref.dtype)
    std_ref[...] = std.astype(std_ref.dtype)

    if affine:
        w = w_ref[...][:, None, :].astype(jnp.float32)      # (1, 1, tc)
        b = b_ref[...][:, None, :].astype(jnp.float32)
        scale = w * inv_std
        shift = b - mean * scale
    else:
        scale = inv_std
        shift = -mean * inv_std
    # One FMA per element instead of sub/div/mul/add chains.
    y_ref[...] = (x * scale + shift).astype(y_ref.dtype)


def _denorm_kernel(x_ref, mean_ref, std_ref, *rest, eps, affine):
    if affine:
        w_ref, b_ref, y_ref = rest
    else:
        (y_ref,) = rest

    x = x_ref[...].astype(jnp.float32)                      # (bb, T, tc)
    mean = mean_ref[...].astype(jnp.float32)                # (bb, 1, tc)
    std = std_ref[...].astype(jnp.float32)
    if affine:
        w = w_ref[...][:, None, :].astype(jnp.float32)
        b = b_ref[...][:, None, :].astype(jnp.float32)
        scale = std / (w + eps * eps)                       # exact, O(C) only
        shift = mean - b * scale
    else:
        scale = std
        shift = mean
    y_ref[...] = (x * scale + shift).astype(y_ref.dtype)


# ----------------------------- wrappers ------------------------------------


def revnorm_norm(x, weight=None, bias=None, *, eps=1e-5, affine=True):
    """mode='norm': returns (normalized_x, mean, stdev)."""
    B, T, C = x.shape
    bb, tc = _pick_tiles(B, T, C, x.dtype.itemsize)
    grid = (B // bb, C // tc)

    x_spec = pl.BlockSpec((bb, T, tc), lambda b, c: (b, 0, c))
    vec_spec = pl.BlockSpec((1, tc), lambda b, c: (0, c))
    stat_spec = pl.BlockSpec((bb, 1, tc), lambda b, c: (b, 0, c))

    in_specs = [x_spec]
    args = [x]
    if affine:
        in_specs += [vec_spec, vec_spec]
        args += [weight.reshape(1, C), bias.reshape(1, C)]

    kernel = functools.partial(_norm_kernel, eps=eps, affine=affine)
    out_shapes = (
        jax.ShapeDtypeStruct((B, T, C), x.dtype),
        jax.ShapeDtypeStruct((B, 1, C), jnp.float32),
        jax.ShapeDtypeStruct((B, 1, C), jnp.float32),
    )
    return pl.pallas_call(
        kernel,
        out_shape=out_shapes,
        grid_spec=pltpu.PrefetchScalarGridSpec(
            num_scalar_prefetch=0,
            grid=grid,
            in_specs=in_specs,
            out_specs=[x_spec, stat_spec, stat_spec],
        ),
        compiler_params=pltpu.CompilerParams(
            dimension_semantics=("parallel", "parallel"),
            vmem_limit_bytes=_vmem_limit_bytes(bb, T, tc, x.dtype.itemsize),
        ),
    )(*args)


def revnorm_denorm(x, mean, stdev, weight=None, bias=None, *, eps=1e-5,
                   affine=True):
    """mode='denorm': inverts the normalization using stored mean/stdev."""
    B, T, C = x.shape
    bb, tc = _pick_tiles(B, T, C, x.dtype.itemsize)
    grid = (B // bb, C // tc)

    x_spec = pl.BlockSpec((bb, T, tc), lambda b, c: (b, 0, c))
    vec_spec = pl.BlockSpec((1, tc), lambda b, c: (0, c))
    stat_spec = pl.BlockSpec((bb, 1, tc), lambda b, c: (b, 0, c))

    in_specs = [x_spec, stat_spec, stat_spec]
    args = [x, mean, stdev]
    if affine:
        in_specs += [vec_spec, vec_spec]
        args += [weight.reshape(1, C), bias.reshape(1, C)]

    kernel = functools.partial(_denorm_kernel, eps=eps, affine=affine)
    return pl.pallas_call(
        kernel,
        out_shape=jax.ShapeDtypeStruct((B, T, C), x.dtype),
        grid_spec=pltpu.PrefetchScalarGridSpec(
            num_scalar_prefetch=0,
            grid=grid,
            in_specs=in_specs,
            out_specs=x_spec,
        ),
        compiler_params=pltpu.CompilerParams(
            dimension_semantics=("parallel", "parallel"),
            vmem_limit_bytes=_vmem_limit_bytes(bb, T, tc, x.dtype.itemsize),
        ),
    )(*args)


class RevNormPallas:
    """Stateful wrapper mirroring the PyTorch RevNorm module (subtract_last=False)."""

    def __init__(self, num_features, eps=1e-5, affine=True):
        self.num_features = num_features
        self.eps = eps
        self.affine = affine
        if affine:
            self.affine_weight = jnp.ones((num_features,), jnp.float32)
            self.affine_bias = jnp.zeros((num_features,), jnp.float32)
        else:
            self.affine_weight = None
            self.affine_bias = None
        self.mean = None
        self.stdev = None
        # TODO(synk): subtract_last=True branch not implemented (default is False).

    def __call__(self, x, mode):
        if mode == "norm":
            y, self.mean, self.stdev = revnorm_norm(
                x, self.affine_weight, self.affine_bias,
                eps=self.eps, affine=self.affine)
            return y
        elif mode == "denorm":
            return revnorm_denorm(
                x, self.mean, self.stdev, self.affine_weight, self.affine_bias,
                eps=self.eps, affine=self.affine)
        else:
            raise NotImplementedError


# ----------------------------- reference -----------------------------------


def _ref_norm(x, w, b, eps, affine):
    mean = jnp.mean(x, axis=1, keepdims=True)
    var = jnp.var(x, axis=1, keepdims=True)  # unbiased=False
    std = jnp.sqrt(var + eps)
    y = (x - mean) / std
    if affine:
        y = y * w + b
    return y, mean, std


def _ref_denorm(x, mean, std, w, b, eps, affine):
    if affine:
        x = (x - b) / (w + eps * eps)
    return x * std + mean


if __name__ == "__main__":
    key = jax.random.PRNGKey(0)
    B, T, C = 2, 8, 32   # batch, sequence length, num_features
    x = jax.random.normal(key, (B, T, C), dtype=jnp.float32) * 3.0 + 1.5

    # --- affine=True path ---
    rn = RevNormPallas(num_features=C, eps=1e-5, affine=True)
    y = jax.block_until_ready(rn(x, "norm"))
    x_rec = jax.block_until_ready(rn(y, "denorm"))

    y_ref, mean_ref, std_ref = _ref_norm(x, rn.affine_weight, rn.affine_bias,
                                         rn.eps, True)
    x_rec_ref = _ref_denorm(y_ref, mean_ref, std_ref, rn.affine_weight,
                            rn.affine_bias, rn.eps, True)

    assert jnp.allclose(y, y_ref, atol=1e-5, rtol=1e-5), "norm mismatch"
    assert jnp.allclose(rn.mean, mean_ref, atol=1e-5, rtol=1e-5), "mean mismatch"
    assert jnp.allclose(rn.stdev, std_ref, atol=1e-5, rtol=1e-5), "stdev mismatch"
    assert jnp.allclose(x_rec, x_rec_ref, atol=1e-5, rtol=1e-5), "denorm mismatch"
    assert jnp.allclose(x_rec, x, atol=1e-4, rtol=1e-4), "round-trip mismatch"

    # --- affine=False path (weights/bias never passed to the kernel) ---
    rn2 = RevNormPallas(num_features=C, eps=1e-5, affine=False)
    y2 = jax.block_until_ready(rn2(x, "norm"))
    x2_rec = jax.block_until_ready(rn2(y2, "denorm"))
    y2_ref, mean2_ref, std2_ref = _ref_norm(x, None, None, rn2.eps, False)
    x2_rec_ref = _ref_denorm(y2_ref, mean2_ref, std2_ref, None, None,
                             rn2.eps, False)
    assert jnp.allclose(y2, y2_ref, atol=1e-5, rtol=1e-5), "norm (no affine) mismatch"
    assert jnp.allclose(x2_rec, x2_rec_ref, atol=1e-5, rtol=1e-5), "denorm (no affine) mismatch"
    assert jnp.allclose(x2_rec, x, atol=1e-4, rtol=1e-4), "round-trip (no affine) mismatch"

    # --- lane-dense (C multiple of 128) path exercises the channel tiling ---
    B3, T3, C3 = 2, 16, 256
    x3 = jax.random.normal(jax.random.PRNGKey(1), (B3, T3, C3), jnp.float32) * 2.0 - 0.5
    rn3 = RevNormPallas(num_features=C3, eps=1e-5, affine=True)
    y3 = jax.block_until_ready(rn3(x3, "norm"))
    x3_rec = jax.block_until_ready(rn3(y3, "denorm"))
    y3_ref, m3_ref, s3_ref = _ref_norm(x3, rn3.affine_weight, rn3.affine_bias,
                                       rn3.eps, True)
    assert jnp.allclose(y3, y3_ref, atol=1e-5, rtol=1e-5), "norm (tiled C) mismatch"
    assert jnp.allclose(x3_rec, x3, atol=1e-4, rtol=1e-4), "round-trip (tiled C) mismatch"

    print("KERNEL_OK")
</pallas_src>

<mosaic_0001>
module attributes {stable_mosaic.version = 11 : i64} {
  func.func @_norm_kernel(%arg0: i32, %arg1: i32, %arg2: memref<2x8x32xf32, #tpu.memory_space<vmem>>, %arg3: memref<1x32xf32, #tpu.memory_space<vmem>>, %arg4: memref<1x32xf32, #tpu.memory_space<vmem>>, %arg5: memref<2x8x32xf32, #tpu.memory_space<vmem>>, %arg6: memref<2x1x32xf32, #tpu.memory_space<vmem>>, %arg7: memref<2x1x32xf32, #tpu.memory_space<vmem>>) attributes {dimension_semantics = [#tpu.dimension_semantics<parallel>, #tpu.dimension_semantics<parallel>], iteration_bounds = array<i64: 1, 1>, scalar_prefetch = 0 : i64, scratch_operands = 0 : i64, tpu.core_type = #tpu.core_type<tc>, window_params = [{transform_indices = @transform_0, window_bounds = array<i64: 2, 8, 32>}, {transform_indices = @transform_1, window_bounds = array<i64: 1, 32>}, {transform_indices = @transform_2, window_bounds = array<i64: 1, 32>}, {transform_indices = @transform_3, window_bounds = array<i64: 2, 8, 32>}, {transform_indices = @transform_4, window_bounds = array<i64: 2, 1, 32>}, {transform_indices = @transform_5, window_bounds = array<i64: 2, 1, 32>}]} {
    %c0 = arith.constant 0 : index
    %c0_0 = arith.constant 0 : index
    %c0_1 = arith.constant 0 : index
    %0 = vector.load %arg2[%c0, %c0_0, %c0_1] : memref<2x8x32xf32, #tpu.memory_space<vmem>>, vector<2x8x32xf32>
    %cst = arith.constant dense<0.000000e+00> : vector<2x32xf32>
    %1 = vector.multi_reduction <add>, %0, %cst [1] : vector<2x8x32xf32> to vector<2x32xf32>
    %2 = vector.shape_cast %1 : vector<2x32xf32> to vector<2x1x32xf32>
    %cst_2 = arith.constant 8.000000e+00 : f32
    %3 = vector.broadcast %cst_2 : f32 to vector<2x1x32xf32>
    %4 = arith.divf %2, %3 : vector<2x1x32xf32>
    %5 = vector.broadcast %4 : vector<2x1x32xf32> to vector<2x8x32xf32>
    %6 = arith.subf %0, %5 : vector<2x8x32xf32>
    %7 = arith.mulf %6, %6 : vector<2x8x32xf32>
    %cst_3 = arith.constant dense<0.000000e+00> : vector<2x32xf32>
    %8 = vector.multi_reduction <add>, %7, %cst_3 [1] : vector<2x8x32xf32> to vector<2x32xf32>
    %9 = vector.shape_cast %8 : vector<2x32xf32> to vector<2x1x32xf32>
    %cst_4 = arith.constant 8.000000e+00 : f32
    %10 = vector.broadcast %cst_4 : f32 to vector<2x1x32xf32>
    %11 = arith.divf %9, %10 : vector<2x1x32xf32>
    %cst_5 = arith.constant 9.99999974E-6 : f32
    %12 = vector.broadcast %cst_5 : f32 to vector<2x1x32xf32>
    %13 = arith.addf %11, %12 : vector<2x1x32xf32>
    %14 = math.sqrt %13 : vector<2x1x32xf32>
    %cst_6 = arith.constant 1.000000e+00 : f32
    %15 = vector.broadcast %cst_6 : f32 to vector<2x1x32xf32>
    %16 = arith.divf %15, %14 : vector<2x1x32xf32>
    %c0_7 = arith.constant 0 : index
    %c0_8 = arith.constant 0 : index
    %c0_9 = arith.constant 0 : index
    %17 = vector.load %arg6[%c0_7, %c0_8, %c0_9] : memref<2x1x32xf32, #tpu.memory_space<vmem>>, vector<2x1x32xf32>
    tpu.vector_store %arg6[%c0_7, %c0_8, %c0_9], %4 {strides = array<i32>} : memref<2x1x32xf32, #tpu.memory_space<vmem>>, vector<2x1x32xf32>,
    %c0_10 = arith.constant 0 : index
    %c0_11 = arith.constant 0 : index
    %c0_12 = arith.constant 0 : index
    %18 = vector.load %arg7[%c0_10, %c0_11, %c0_12] : memref<2x1x32xf32, #tpu.memory_space<vmem>>, vector<2x1x32xf32>
    tpu.vector_store %arg7[%c0_10, %c0_11, %c0_12], %14 {strides = array<i32>} : memref<2x1x32xf32, #tpu.memory_space<vmem>>, vector<2x1x32xf32>,
    %c0_13 = arith.constant 0 : index
    %c0_14 = arith.constant 0 : index
    %19 = vector.load %arg3[%c0_13, %c0_14] : memref<1x32xf32, #tpu.memory_space<vmem>>, vector<1x32xf32>
    %20 = vector.shape_cast %19 : vector<1x32xf32> to vector<1x1x32xf32>
    %c0_15 = arith.constant 0 : index
    %c0_16 = arith.constant 0 : index
    %21 = vector.load %arg4[%c0_15, %c0_16] : memref<1x32xf32, #tpu.memory_space<vmem>>, vector<1x32xf32>
    %22 = vector.shape_cast %21 : vector<1x32xf32> to vector<1x1x32xf32>
    %23 = vector.broadcast %20 : vector<1x1x32xf32> to vector<2x1x32xf32>
    %24 = arith.mulf %23, %16 : vector<2x1x32xf32>
    %25 = arith.mulf %4, %24 : vector<2x1x32xf32>
    %26 = vector.broadcast %22 : vector<1x1x32xf32> to vector<2x1x32xf32>
    %27 = arith.subf %26, %25 : vector<2x1x32xf32>
    %28 = vector.broadcast %24 : vector<2x1x32xf32> to vector<2x8x32xf32>
    %29 = arith.mulf %0, %28 : vector<2x8x32xf32>
    %30 = vector.broadcast %27 : vector<2x1x32xf32> to vector<2x8x32xf32>
    %31 = arith.addf %29, %30 : vector<2x8x32xf32>
    %c0_17 = arith.constant 0 : index
    %c0_18 = arith.constant 0 : index
    %c0_19 = arith.constant 0 : index
    %32 = vector.load %arg5[%c0_17, %c0_18, %c0_19] : memref<2x8x32xf32, #tpu.memory_space<vmem>>, vector<2x8x32xf32>
    tpu.vector_store %arg5[%c0_17, %c0_18, %c0_19], %31 {strides = array<i32>} : memref<2x8x32xf32, #tpu.memory_space<vmem>>, vector<2x8x32xf32>,
    return
  }
  func.func @transform_0(%arg0: i32, %arg1: i32) -> (i32, i32, i32) {
    %c0_i32 = arith.constant 0 : i32
    %c0_i32_0 = arith.constant 0 : i32
    return %arg0, %c0_i32, %arg1 : i32, i32, i32
  }
  func.func @transform_1(%arg0: i32, %arg1: i32) -> (i32, i32) {
    %c0_i32 = arith.constant 0 : i32
    %c0_i32_0 = arith.constant 0 : i32
    return %c0_i32, %arg1 : i32, i32
  }
  func.func @transform_2(%arg0: i32, %arg1: i32) -> (i32, i32) {
    %c0_i32 = arith.constant 0 : i32
    %c0_i32_0 = arith.constant 0 : i32
    return %c0_i32, %arg1 : i32, i32
  }
  func.func @transform_3(%arg0: i32, %arg1: i32) -> (i32, i32, i32) {
    %c0_i32 = arith.constant 0 : i32
    %c0_i32_0 = arith.constant 0 : i32
    return %arg0, %c0_i32, %arg1 : i32, i32, i32
  }
  func.func @transform_4(%arg0: i32, %arg1: i32) -> (i32, i32, i32) {
    %c0_i32 = arith.constant 0 : i32
    %c0_i32_0 = arith.constant 0 : i32
    return %arg0, %c0_i32, %arg1 : i32, i32, i32
  }
  func.func @transform_5(%arg0: i32, %arg1: i32) -> (i32, i32, i32) {
    %c0_i32 = arith.constant 0 : i32
    %c0_i32_0 = arith.constant 0 : i32
    return %arg0, %c0_i32, %arg1 : i32, i32, i32
  }
}

</mosaic_0001>

<bundles_post_ra>
// kernel: tpu_custom_call.1
= control target key start
LH: loop header
LB: loop body
LE: loop exit
PB: predicated region body
PF: predicated region fallthrough
CT: control target
= control target key end

     0   :  { %11 = vsyncpa [#allocation3], 0  ;;  %s485_s0 = inlined_call_operand.hbm [shape: f32[2,8,32], index: 0, kind: input, shape index: {}]   ;;  %s486_s1 = inlined_call_operand.hbm [shape: f32[1,32], index: 1, kind: input, shape index: {}]   ;;  %s487_s2 = inlined_call_operand.vmem [shape: f32[1,32], index: 2, kind: input, shape index: {}]   ;;  %s488_s3 = inlined_call_operand.hbm [shape: f32[2,8,32], index: 3, kind: output, shape index: {0}]   ;;  %s489_s4 = inlined_call_operand.hbm [shape: f32[2,1,32], index: 4, kind: output, shape index: {1}]   ;;  %s490_s5 = inlined_call_operand.hbm [shape: f32[2,1,32], index: 5, kind: output, shape index: {2}]  }
   0x1   :  { %12 = vsyncpa [#allocation6], 0 }
   0x2   :  { %13 = vsyncpa [#allocation4], 0 }
   0x3   :  { %14 = vsyncpa [#allocation9], 0  ;;  %s19_s20 = sshll.u32 %s485_s0, 4  ;;  %s385_s21 = smov [#allocation2]   ;;  %s20_s20 = int_to_ptr.hbm [resolvable:$true] %s19_s20 }
   0x4   :  { %s21_s22 = sshll.u32 %s385_s21, 4  ;;  %s33_s25 = sshll.u32 %s486_s1, 4  ;;  %s22_s22 = int_to_ptr.vmem [resolvable:$true] %s21_s22  ;;  %s34_s25 = int_to_ptr.hbm [resolvable:$true] %s33_s25 }
   0x5   :  { %s386_s26 = smov 128   ;;  %s387_s27 = smov 8  }
   0x6   :  { %27 = dma.hbm_to_vmem [thread:$0]  %s20_s20, 256, %s22_s22, [#allocation3], %s386_s26, %s386_s26, %s387_s27  }
   0x7   :  { %s388_s28 = smov [#allocation5]  }
   0x8   :  { %s35_s29 = sshll.u32 %s388_s28, 4  ;;  %s36_s29 = int_to_ptr.vmem [resolvable:$true] %s35_s29 }
   0x9   :  { %38 = dma.hbm_to_vmem [thread:$0]  %s34_s25, 16, %s36_s29, [#allocation6]  }
   0xa   :  { %377 = dma.done.wait [#allocation3], 256  }
   0xb   :  { %378 = vsyncadd [#allocation3], 4294967040 }
   0xc   :  { %379 = dma.done.wait [#allocation6], 16  }
   0xd   :  { %380 = vsyncadd [#allocation6], 4294967280  ;;  %v389_v0 = vmov 8.0   ;;  %vm51_vm0 = vcmask 261120   ;;  %v434_v2 = vld [vmem:[#allocation2] sm:$0xff]  ;;  %v436_v3 = vld [vmem:[#allocation2 + $0x8] sm:$0xff] }
   0xe   :  { %247 = vrcp.f32 %v389_v0  ;;  %v52_v4 = vsel %vm51_vm0, %v434_v2, 0.0  ;;  %v59_v6 = vsel %vm51_vm0, %v436_v3, 0.0  ;;  %s390_s0 = smov [#allocation8]   ;;  %s201_s7 = sshll.u32 %s489_s4, 4  ;;  %vm151_vm2 = vcmask 253952   ;;  %s202_s7 = int_to_ptr.hbm [resolvable:$true] %s201_s7 }
   0xf   :  { %v53_v7 = vrot.slane %v52_v4, 4  ;;  %v60_v8 = vrot.slane %v59_v6, 4  ;;  %s199_s1 = sshll.u32 %s390_s0, 4  ;;  %s391_s4 = smov 16   ;;  %s200_s1 = int_to_ptr.vmem [resolvable:$true] %s199_s1 }
  0x10   :  { %s392_s8 = smov 1   ;;  %s393_s9 = smov [#allocation10]  }
  0x11   :  { %v54_v10 = vadd.f32 %v53_v7, %v52_v4  ;;  %v61_v11 = vadd.f32 %v60_v8, %v59_v6  ;;  %s212_s10 = sshll.u32 %s393_s9, 4  ;;  %s214_s13 = sshll.u32 %s490_s5, 4  ;;  %s213_s10 = int_to_ptr.vmem [resolvable:$true] %s212_s10  ;;  %s215_s13 = int_to_ptr.hbm [resolvable:$true] %s214_s13 }
  0x12   :  { %s394_s15 = smov [#allocation7]  }
  0x13   :  { %v55_v13 = vrot.slane %v54_v10, 2  ;;  %v62_v14 = vrot.slane %v61_v11, 2  ;;  %s186_s16 = sshll.u32 %s394_s15, 4  ;;  %s187_s16 = int_to_ptr.vmem [resolvable:$true] %s186_s16 }
  0x14   :  { %v248_v1 = vpop.eup %247 }
  0x15   :  { %v67_v5 = vmul.f32 8.0, %v248_v1  ;;  %v56_v16 = vadd.f32 %v55_v13, %v54_v10  ;;  %vm71_vm1 = vweird.f32 %v248_v1  ;;  %v63_v17 = vadd.f32 %v62_v14, %v61_v11 }
  0x17   :  { %v68_v9 = vsub.f32 1.0, %v67_v5  ;;  %v57_v18 = vrot.slane %v56_v16, 1  ;;  %v64_v19 = vrot.slane %v63_v17, 1 }
  0x19   :  { %v69_v12 = vmul.f32 %v248_v1, %v68_v9  ;;  %v58_v21 = vadd.f32 %v57_v18, %v56_v16  ;;  %v65_v22 = vadd.f32 %v64_v19, %v63_v17 }
  0x1b   :  { %v70_v15 = vadd.f32 %v248_v1, %v69_v12 }
  0x1d   :  { %v72_v20 = vsel %vm71_vm1, %v248_v1, %v70_v15 }
  0x1e   :  { %v445_v23 = vmul.f32 %v72_v20, %v58_v21  ;;  %v447_v24 = vmul.f32 %v72_v20, %v65_v22 }
  0x20   :  { %v75_v25 = vsub.f32 %v434_v2, %v445_v23  ;;  %152 = vst.msk [vmem:[#allocation8] sm:$0x1] %vm151_vm2, %v445_v23  ;;  %v76_v26 = vsub.f32 %v436_v3, %v447_v24 }
  0x21   :  { %153 = vst.msk [vmem:[#allocation8 + $0x1] sm:$0x1] %vm151_vm2, %v447_v24 }
  0x22   :  { %v77_v27 = vmul.f32 %v75_v25, %v75_v25  ;;  %v78_v28 = vmul.f32 %v76_v26, %v76_v26  ;;  %207 = dma.vmem_to_hbm [thread:$0]  %s200_s1, 32, %s202_s7, [#allocation9], %s391_s4, %s391_s4, %s392_s8  }
  0x24   :  { %v79_v29 = vsel %vm51_vm0, %v77_v27, 0.0  ;;  %v86_v30 = vsel %vm51_vm0, %v78_v28, 0.0 }
  0x25   :  { %v80_v31 = vrot.slane %v79_v29, 4  ;;  %v87_v32 = vrot.slane %v86_v30, 4 }
  0x27   :  { %v81_v33 = vadd.f32 %v80_v31, %v79_v29  ;;  %v88_v34 = vadd.f32 %v87_v32, %v86_v30  ;;  %v157_v29 = vld [vmem:[%s487_s2] sm:$0x1]  ;;  %s188_s2 = sshll.u32 %s488_s3, 4  ;;  %s189_s2 = int_to_ptr.hbm [resolvable:$true] %s188_s2 }
  0x29   :  { %v82_v35 = vrot.slane %v81_v33, 2  ;;  %v89_v36 = vrot.slane %v88_v34, 2 }
  0x2b   :  { %v83_v37 = vadd.f32 %v82_v35, %v81_v33  ;;  %v90_v38 = vadd.f32 %v89_v36, %v88_v34 }
  0x2d   :  { %v84_v39 = vrot.slane %v83_v37, 1  ;;  %v91_v40 = vrot.slane %v90_v38, 1 }
  0x2f   :  { %v85_v41 = vadd.f32 %v84_v39, %v83_v37  ;;  %v92_v42 = vadd.f32 %v91_v40, %v90_v38 }
  0x31   :  { %v93_v43 = vmul.f32 %v85_v41, %v72_v20  ;;  %v94_v44 = vmul.f32 %v92_v42, %v72_v20  ;;  %v156_v20 = vld [vmem:[#allocation5] sm:$0x1] }
  0x33   :  { %v95_v45 = vadd.f32 1e-05, %v93_v43  ;;  %v96_v46 = vadd.f32 1e-05, %v94_v44 }
  0x35   :  { %249 = vrsqrt.f32 %v95_v45  ;;  %vm104_vm3 = vcmp.eq.f32.partialorder %v95_v45, inf  ;;  %v107_v58 = vand.u32 2147483648, %v95_v45  ;;  %vm106_vm4 = vcmp.eq.f32.partialorder %v95_v45, 0.0 }
  0x36   :  { %251 = vrsqrt.f32 %v96_v46  ;;  %vm116_vm5 = vcmp.eq.f32.partialorder %v96_v46, inf  ;;  %v119_v61 = vand.u32 2147483648, %v96_v46  ;;  %vm118_vm6 = vcmp.eq.f32.partialorder %v96_v46, 0.0 }
  0x3b   :  { %v250_v47 = vpop.eup %249 }
  0x3c   :  { %v252_v48 = vpop.eup %251  ;;  %v98_v49 = vmul.f32 %v250_v47, %v95_v45 }
  0x3d   :  { %v110_v50 = vmul.f32 %v252_v48, %v96_v46 }
  0x3e   :  { %v99_v51 = vmul.f32 %v250_v47, %v98_v49 }
  0x3f   :  { %v111_v52 = vmul.f32 %v252_v48, %v110_v50 }
  0x40   :  { %v100_v53 = vmul.f32 0.5, %v99_v51 }
  0x41   :  { %v112_v54 = vmul.f32 0.5, %v111_v52 }
  0x42   :  { %v101_v55 = vsub.f32 1.5, %v100_v53 }
  0x43   :  { %v113_v56 = vsub.f32 1.5, %v112_v54 }
  0x44   :  { %v102_v57 = vmul.f32 %v250_v47, %v101_v55 }
  0x45   :  { %v114_v59 = vmul.f32 %v252_v48, %v113_v56 }
  0x46   :  { %v103_v60 = vmul.f32 %v102_v57, %v95_v45 }
  0x47   :  { %v115_v62 = vmul.f32 %v114_v59, %v96_v46 }
  0x48   :  { %v105_v63 = vsel %vm104_vm3, %v95_v45, %v103_v60 }
  0x49   :  { %v108_v0 = vsel %vm106_vm4, %v107_v58, %v105_v63  ;;  %v117_v1 = vsel %vm116_vm5, %v96_v46, %v115_v62 }
  0x4a   :  { %253 = vrcp.f32 %v108_v0  ;;  %154 = vst.msk [vmem:[#allocation10] sm:$0x1] %vm151_vm2, %v108_v0  ;;  %v120_v4 = vsel %vm118_vm6, %v119_v61, %v117_v1  ;;  %vm126_vm7 = vweird.f32 %v108_v0  ;;  %v132_v9 = vand.u32 2147483648, %v108_v0 }
  0x4b   :  { %255 = vrcp.f32 %v120_v4  ;;  %155 = vst.msk [vmem:[#allocation10 + $0x1] sm:$0x1] %vm151_vm2, %v120_v4  ;;  %v130_v11 = vand.u32 2147483647, %v108_v0  ;;  %v147_v12 = vand.u32 2147483648, %v120_v4  ;;  %vm141_vm9 = vweird.f32 %v120_v4 }
  0x4c   :  { %220 = dma.vmem_to_hbm [thread:$0]  %s213_s10, 32, %s215_s13, [#allocation9], %s391_s4, %s391_s4, %s392_s8   ;;  %v145_v14 = vand.u32 2147483647, %v120_v4  ;;  %v133_v16 = vor.u32 1.1754944e-38, %v132_v9 }
  0x4d   :  { %vm131_vm12 = vcmp.eq.f32.partialorder %v130_v11, 8.507059e+37  ;;  %v148_v19 = vor.u32 1.1754944e-38, %v147_v12 }
  0x4e   :  { %vm146_vm14 = vcmp.eq.f32.partialorder %v145_v14, 8.507059e+37 }
  0x50   :  { %v254_v5 = vpop.eup %253 }
  0x51   :  { %v256_v6 = vpop.eup %255  ;;  %v122_v7 = vmul.f32 %v254_v5, %v108_v0  ;;  %vm127_vm8 = vweird.f32 %v254_v5 }
  0x52   :  { %v137_v8 = vmul.f32 %v256_v6, %v120_v4  ;;  %vm142_vm10 = vweird.f32 %v256_v6  ;;  %vm128_vm11 = vmor %vm126_vm7, %vm127_vm8 }
  0x53   :  { %v123_v10 = vsub.f32 1.0, %v122_v7  ;;  %vm143_vm13 = vmor %vm141_vm9, %vm142_vm10 }
  0x54   :  { %v138_v13 = vsub.f32 1.0, %v137_v8 }
  0x55   :  { %v124_v15 = vmul.f32 %v254_v5, %v123_v10 }
  0x56   :  { %v139_v17 = vmul.f32 %v256_v6, %v138_v13 }
  0x57   :  { %v125_v18 = vadd.f32 %v254_v5, %v124_v15 }
  0x58   :  { %v140_v21 = vadd.f32 %v256_v6, %v139_v17 }
  0x59   :  { %v129_v22 = vsel %vm128_vm11, %v254_v5, %v125_v18 }
  0x5a   :  { %v134_v25 = vsel %vm131_vm12, %v133_v16, %v129_v22  ;;  %v144_v26 = vsel %vm143_vm13, %v256_v6, %v140_v21 }
  0x5b   :  { %v158_v27 = vmul.f32 %v156_v20, %v134_v25  ;;  %v149_v28 = vsel %vm146_vm14, %v148_v19, %v144_v26 }
  0x5c   :  { %v159_v30 = vmul.f32 %v156_v20, %v149_v28 }
  0x5d   :  { %v160_v31 = vmul.f32 %v158_v27, %v445_v23  ;;  %v166_v32 = vperm.slane %v158_v27, 0 }
  0x5e   :  { %v161_v33 = vmul.f32 %v159_v30, %v447_v24  ;;  %v167_v34 = vperm.slane %v159_v30, 0 }
  0x5f   :  { %v162_v35 = vsub.f32 %v157_v29, %v160_v31  ;;  %v170_v36 = vmul.f32 %v166_v32, %v434_v2 }
  0x60   :  { %v163_v37 = vsub.f32 %v157_v29, %v161_v33  ;;  %v171_v38 = vmul.f32 %v167_v34, %v436_v3 }
  0x61   :  { %v174_v39 = vperm.slane %v162_v35, 0 }
  0x62   :  { %v175_v40 = vperm.slane %v163_v37, 0 }
  0x63   :  { %v178_v41 = vadd.f32 %v174_v39, %v170_v36 }
  0x64   :  { %v179_v23 = vadd.f32 %v175_v40, %v171_v38 }
  0x65   :  { %180 = vst.msk [vmem:[#allocation7] sm:$0xff] %vm51_vm0, %v178_v41 }
  0x66   :  { %181 = vst.msk [vmem:[#allocation7 + $0x8] sm:$0xff] %vm51_vm0, %v179_v23 }
  0x67   :  { %194 = dma.vmem_to_hbm [thread:$0]  %s187_s16, 256, %s189_s2, [#allocation4], %s386_s26, %s386_s26, %s387_s27  }
  0x68   :  { %381 = dma.done.wait [#allocation4], 256  }
  0x69   :  { %382 = vsyncadd [#allocation4], 4294967040 }
  0x6a   :  { %383 = dma.done.wait [#allocation9], 64  }
  0x6b   :  { %384 = vsyncadd [#allocation9], 4294967232 }
  0x6c   :  { %233 = vsyncpa [#allocation3], 1 }
  0x6d   :  { %234 = vsyncpa [#allocation6], 1 }
  0x6e   :  { %235 = vsyncpa [#allocation4], 1 }
  0x6f   :  { %236 = vsyncpa [#allocation9], 1 }

</bundles_post_ra>
